<compile_context>
chip_gen: v5e
topology: v5e:2x2
jax: 0.10.0
libtpu: 0.0.40
codegen_flags: <defaults>
</compile_context>

<pallas_src>
import functools

import jax
import jax.numpy as jnp
import numpy as np
from jax.experimental import pallas as pl
from jax.experimental.pallas import tpu as pltpu


def _round_up(x, m):
    return ((x + m - 1) // m) * m


# ----------------------------------------------------------------------------
# Pallas kernel: fused  MLP -> (mu, coeff) -> coeff*(feat-mu)^2 -> Linear ->
#                residual add -> mask
# ----------------------------------------------------------------------------
def _harmonic_kernel(x_ref, f_ref, m_ref,
                     w1_ref, b1_ref,
                     w2_ref, b2_ref,
                     w3_ref, b3_ref,
                     o_ref, *, dim):
    x = x_ref[...].astype(jnp.float32)                         # (tm, D)
    # hidden layer of the MLP (softplus activation, as in chroma graph.MLP)
    h = jnp.dot(x, w1_ref[...], preferred_element_type=jnp.float32) + b1_ref[...]
    h = jax.nn.softplus(h)                                     # (tm, H)
    # output layer of the MLP: single fused (H, 2D) matmul, then split the
    # (tm, 2D) result into mu / coeff halves (same semantics as the original
    # column slicing of the MLP output)
    pred = jnp.dot(h, w2_ref[...], preferred_element_type=jnp.float32) + b2_ref[...]
    mu = pred[:, :dim]
    coeff = pred[:, dim:]
    # quadratic "harmonic" error feature
    diff = f_ref[...].astype(jnp.float32) - mu
    err = coeff * diff * diff                                  # (tm, D)
    # output Linear + residual
    upd = jnp.dot(err, w3_ref[...], preferred_element_type=jnp.float32) + b3_ref[...]
    out = x + upd
    # mask (broadcast over the feature dim); padded rows have mask == 0
    o_ref[...] = (m_ref[...] * out).astype(o_ref.dtype)


def _harmonic_pallas(x2d, feat2d, mask1d, params, *, tile_m):
    """x2d, feat2d: (M, D); mask1d: (M,). Returns (M, D)."""
    M, D = x2d.shape
    w1, b1, w2, b2, w3, b3 = params
    H = w1.shape[1]

    # ---- tile / grid selection (no divisibility requirement on M) ----------
    tile_m = max(8, min(tile_m, _round_up(M, 8)))
    tile_m = _round_up(tile_m, 8)
    m_pad = _round_up(M, tile_m)
    grid = m_pad // tile_m

    mask2d = mask1d.reshape(M, 1).astype(x2d.dtype)
    if m_pad != M:
        pad = ((0, m_pad - M), (0, 0))
        x2d = jnp.pad(x2d, pad)
        feat2d = jnp.pad(feat2d, pad)
        mask2d = jnp.pad(mask2d, pad)   # padded rows masked to 0

    # ---- VMEM budget: only raise the scoped limit when actually needed -----
    itemsize = jnp.dtype(x2d.dtype).itemsize
    row_bytes = 2 * tile_m * (3 * D + 1) * itemsize            # x/feat/out + mask, 2-buf
    w_bytes = 2 * 4 * (D * H + H + H * 2 * D + 2 * D + D * D + D)
    vmem_need = row_bytes + w_bytes
    vmem_limit = None
    if vmem_need > 16 * 1024 * 1024:
        vmem_limit = min(int(vmem_need * 1.5), 100 * 1024 * 1024)

    def row_spec(cols):
        return pl.BlockSpec((tile_m, cols), lambda i: (i, 0))

    def full_spec(shape):
        return pl.BlockSpec(shape, lambda i: (0,) * len(shape))

    grid_spec = pltpu.PrefetchScalarGridSpec(
        num_scalar_prefetch=0,
        grid=(grid,),
        in_specs=[
            row_spec(D),                 # x
            row_spec(D),                 # feature
            row_spec(1),                 # mask
            full_spec((D, H)), full_spec((1, H)),        # MLP hidden layer
            full_spec((H, 2 * D)), full_spec((1, 2 * D)),  # MLP out (fused mu|coeff)
            full_spec((D, D)), full_spec((1, D)),        # node_out / edge_out Linear
        ],
        out_specs=row_spec(D),
    )

    out = pl.pallas_call(
        functools.partial(_harmonic_kernel, dim=D),
        out_shape=jax.ShapeDtypeStruct((m_pad, D), x2d.dtype),
        grid_spec=grid_spec,
        compiler_params=pltpu.CompilerParams(
            dimension_semantics=("parallel",),
            vmem_limit_bytes=vmem_limit),
    )(x2d, feat2d, mask2d,
      w1, b1.reshape(1, H),
      w2, b2.reshape(1, 2 * D),
      w3, b3.reshape(1, D))

    if m_pad != M:
        out = out[:M]
    return out


# ----------------------------------------------------------------------------
# Module wrapper
# ----------------------------------------------------------------------------
def _linear_init(key, fan_in, fan_out):
    """Deterministic nn.Linear-style init: U(-1/sqrt(fan_in), 1/sqrt(fan_in))."""
    kw, kb = jax.random.split(key)
    bound = 1.0 / np.sqrt(fan_in)
    w = jax.random.uniform(kw, (fan_in, fan_out), jnp.float32, -bound, bound)
    b = jax.random.uniform(kb, (fan_out,), jnp.float32, -bound, bound)
    return w, b


def init_graph_harmonic_features(key, dim_nodes, dim_edges,
                                 node_mlp_dim, edge_mlp_dim):
    """Parameters for node_mlp (1 hidden layer), edge_mlp (1 hidden layer),
    node_out, edge_out.  node_mlp_layers = edge_mlp_layers = 1."""
    keys = jax.random.split(key, 6)
    # node_mlp: Linear(Dn, Hn) -> softplus -> Linear(Hn, 2*Dn)
    n_w1, n_b1 = _linear_init(keys[0], dim_nodes, node_mlp_dim)
    n_w2, n_b2 = _linear_init(keys[1], node_mlp_dim, 2 * dim_nodes)
    # node_out: Linear(Dn, Dn)
    n_w3, n_b3 = _linear_init(keys[2], dim_nodes, dim_nodes)
    # edge_mlp: Linear(De, He) -> softplus -> Linear(He, 2*De)
    e_w1, e_b1 = _linear_init(keys[3], dim_edges, edge_mlp_dim)
    e_w2, e_b2 = _linear_init(keys[4], edge_mlp_dim, 2 * dim_edges)
    # edge_out: Linear(De, De)
    e_w3, e_b3 = _linear_init(keys[5], dim_edges, dim_edges)
    return {
        "node": (n_w1, n_b1, n_w2, n_b2, n_w3, n_b3),
        "edge": (e_w1, e_b1, e_w2, e_b2, e_w3, e_b3),
    }


def graph_harmonic_features(params, node_h, node_feature,
                            edge_h, edge_feature, mask_i, mask_ij,
                            *, node_tile=1024, edge_tile=1024):
    # NOTE: edge_idx from the PyTorch signature is unused by the forward pass.
    B, N, Dn = node_h.shape
    _, _, K, De = edge_h.shape

    # ---- node path (usually a single grid step: tile capped at B*N) --------
    node_out = _harmonic_pallas(
        node_h.reshape(B * N, Dn),
        node_feature.reshape(B * N, Dn),
        mask_i.reshape(B * N).astype(node_h.dtype),
        params["node"], tile_m=node_tile,
    ).reshape(B, N, Dn)

    # ---- edge path ----------------------------------------------------------
    edge_out = _harmonic_pallas(
        edge_h.reshape(B * N * K, De),
        edge_feature.reshape(B * N * K, De),
        mask_ij.reshape(B * N * K).astype(edge_h.dtype),
        params["edge"], tile_m=edge_tile,
    ).reshape(B, N, K, De)

    return node_out, edge_out


# ----------------------------------------------------------------------------
# Pure-JAX reference (for verification)
# ----------------------------------------------------------------------------
def _ref_path(x, feat, mask, params, D):
    w1, b1, w2, b2, w3, b3 = params
    h = jax.nn.softplus(x @ w1 + b1)
    pred = h @ w2 + b2
    mu, coeff = pred[..., :D], pred[..., D:]
    err = coeff * (feat - mu) ** 2
    out = x + (err @ w3 + b3)
    return mask[..., None] * out


def graph_harmonic_features_ref(params, node_h, node_feature,
                                edge_h, edge_feature, mask_i, mask_ij):
    Dn = node_h.shape[-1]
    De = edge_h.shape[-1]
    return (_ref_path(node_h, node_feature, mask_i, params["node"], Dn),
            _ref_path(edge_h, edge_feature, mask_ij, params["edge"], De))


# ----------------------------------------------------------------------------
if __name__ == "__main__":
    # Shapes deliberately NOT multiples of the tile size so the cdiv/padding
    # path and a multi-step grid are both exercised.
    B, N, K = 2, 15, 7
    dim_nodes, dim_edges = 32, 32
    node_mlp_dim, edge_mlp_dim = 32, 32

    key = jax.random.PRNGKey(0)
    k_par, k_nh, k_nf, k_eh, k_ef, k_mi, k_mij = jax.random.split(key, 7)

    params = init_graph_harmonic_features(
        k_par, dim_nodes, dim_edges, node_mlp_dim, edge_mlp_dim)

    node_h = jax.random.normal(k_nh, (B, N, dim_nodes), jnp.float32)
    node_feature = jax.random.normal(k_nf, (B, N, dim_nodes), jnp.float32)
    edge_h = jax.random.normal(k_eh, (B, N, K, dim_edges), jnp.float32)
    edge_feature = jax.random.normal(k_ef, (B, N, K, dim_edges), jnp.float32)
    mask_i = (jax.random.uniform(k_mi, (B, N)) > 0.2).astype(jnp.float32)
    mask_ij = (jax.random.uniform(k_mij, (B, N, K)) > 0.2).astype(jnp.float32)
    mask_ij = mask_ij * mask_i[:, :, None]

    # edge_tile=128 forces a 2-step grid (210 rows -> 2 x 128) to also check
    # the multi-tile + padded-last-tile path; defaults use 1024-row tiles.
    node_out, edge_out = graph_harmonic_features(
        params, node_h, node_feature, edge_h, edge_feature, mask_i, mask_ij,
        node_tile=1024, edge_tile=128)
    jax.block_until_ready((node_out, edge_out))

    node_ref, edge_ref = graph_harmonic_features_ref(
        params, node_h, node_feature, edge_h, edge_feature, mask_i, mask_ij)

    np.testing.assert_allclose(np.asarray(node_out), np.asarray(node_ref),
                               rtol=1e-5, atol=1e-5)
    np.testing.assert_allclose(np.asarray(edge_out), np.asarray(edge_ref),
                               rtol=1e-5, atol=1e-5)

    print("KERNEL_OK")
</pallas_src>

<mosaic_0001>
module attributes {stable_mosaic.version = 11 : i64} {
  func.func @_harmonic_kernel(%arg0: i32, %arg1: memref<32x32xf32, #tpu.memory_space<vmem>>, %arg2: memref<32x32xf32, #tpu.memory_space<vmem>>, %arg3: memref<32x1xf32, #tpu.memory_space<vmem>>, %arg4: memref<32x32xf32, #tpu.memory_space<vmem>>, %arg5: memref<1x32xf32, #tpu.memory_space<vmem>>, %arg6: memref<32x64xf32, #tpu.memory_space<vmem>>, %arg7: memref<1x64xf32, #tpu.memory_space<vmem>>, %arg8: memref<32x32xf32, #tpu.memory_space<vmem>>, %arg9: memref<1x32xf32, #tpu.memory_space<vmem>>, %arg10: memref<32x32xf32, #tpu.memory_space<vmem>>) attributes {dimension_semantics = [#tpu.dimension_semantics<parallel>], iteration_bounds = array<i64: 1>, scalar_prefetch = 0 : i64, scratch_operands = 0 : i64, tpu.core_type = #tpu.core_type<tc>, window_params = [{transform_indices = @transform_0, window_bounds = array<i64: 32, 32>}, {transform_indices = @transform_1, window_bounds = array<i64: 32, 32>}, {transform_indices = @transform_2, window_bounds = array<i64: 32, 1>}, {pipeline_mode = #tpu.pipeline_mode<synchronous>, transform_indices = @transform_3, window_bounds = array<i64: 32, 32>}, {pipeline_mode = #tpu.pipeline_mode<synchronous>, transform_indices = @transform_4, window_bounds = array<i64: 1, 32>}, {pipeline_mode = #tpu.pipeline_mode<synchronous>, transform_indices = @transform_5, window_bounds = array<i64: 32, 64>}, {pipeline_mode = #tpu.pipeline_mode<synchronous>, transform_indices = @transform_6, window_bounds = array<i64: 1, 64>}, {pipeline_mode = #tpu.pipeline_mode<synchronous>, transform_indices = @transform_7, window_bounds = array<i64: 32, 32>}, {pipeline_mode = #tpu.pipeline_mode<synchronous>, transform_indices = @transform_8, window_bounds = array<i64: 1, 32>}, {transform_indices = @transform_9, window_bounds = array<i64: 32, 32>}]} {
    %c0 = arith.constant 0 : index
    %c0_0 = arith.constant 0 : index
    %0 = vector.load %arg1[%c0, %c0_0] : memref<32x32xf32, #tpu.memory_space<vmem>>, vector<32x32xf32>
    %c0_1 = arith.constant 0 : index
    %c0_2 = arith.constant 0 : index
    %1 = vector.load %arg4[%c0_1, %c0_2] : memref<32x32xf32, #tpu.memory_space<vmem>>, vector<32x32xf32>
    %cst = arith.constant dense<0.000000e+00> : vector<32x32xf32>
    %2 = tpu.matmul %0, %1, %cst {dimension_numbers = #tpu.dot_dimension_numbers<[1], [0], [0], [1], [0, 0, 1, 1], [], []>} : vector<32x32xf32>, vector<32x32xf32>, vector<32x32xf32> -> vector<32x32xf32>
    %c0_3 = arith.constant 0 : index
    %c0_4 = arith.constant 0 : index
    %3 = vector.load %arg5[%c0_3, %c0_4] : memref<1x32xf32, #tpu.memory_space<vmem>>, vector<1x32xf32>
    %4 = vector.broadcast %3 : vector<1x32xf32> to vector<32x32xf32>
    %5 = arith.addf %2, %4 : vector<32x32xf32>
    %cst_5 = arith.constant 0.000000e+00 : f32
    %6 = vector.broadcast %cst_5 : f32 to vector<32x32xf32>
    %7 = arith.maximumf %5, %6 : vector<32x32xf32>
    %8 = vector.broadcast %cst_5 : f32 to vector<32x32xf32>
    %9 = arith.subf %5, %8 : vector<32x32xf32>
    %10 = arith.cmpf one, %9, %9 : vector<32x32xf32>
    %11 = vector.broadcast %cst_5 : f32 to vector<32x32xf32>
    %12 = arith.addf %5, %11 : vector<32x32xf32>
    %13 = math.absf %9 : vector<32x32xf32>
    %cst_6 = arith.constant 0.000000e+00 : f32
    %14 = vector.broadcast %cst_6 : f32 to vector<32x32xf32>
    %15 = arith.subf %14, %13 : vector<32x32xf32>
    %16 = math.exp %15 : vector<32x32xf32>
    %17 = math.log1p %16 : vector<32x32xf32>
    %18 = arith.addf %7, %17 : vector<32x32xf32>
    %19 = arith.select %10, %12, %18 : vector<32x32xi1>, vector<32x32xf32>
    %c0_7 = arith.constant 0 : index
    %c0_8 = arith.constant 0 : index
    %20 = vector.load %arg6[%c0_7, %c0_8] : memref<32x64xf32, #tpu.memory_space<vmem>>, vector<32x64xf32>
    %cst_9 = arith.constant dense<0.000000e+00> : vector<32x64xf32>
    %21 = tpu.matmul %19, %20, %cst_9 {dimension_numbers = #tpu.dot_dimension_numbers<[1], [0], [0], [1], [0, 0, 1, 1], [], []>} : vector<32x32xf32>, vector<32x64xf32>, vector<32x64xf32> -> vector<32x64xf32>
    %c0_10 = arith.constant 0 : index
    %c0_11 = arith.constant 0 : index
    %22 = vector.load %arg7[%c0_10, %c0_11] : memref<1x64xf32, #tpu.memory_space<vmem>>, vector<1x64xf32>
    %23 = vector.broadcast %22 : vector<1x64xf32> to vector<32x64xf32>
    %24 = arith.addf %21, %23 : vector<32x64xf32>
    %25 = vector.extract_strided_slice %24 {offsets = [0, 0], sizes = [32, 32], strides = [1, 1]} : vector<32x64xf32> to vector<32x32xf32>
    %26 = vector.extract_strided_slice %24 {offsets = [0, 32], sizes = [32, 32], strides = [1, 1]} : vector<32x64xf32> to vector<32x32xf32>
    %c0_12 = arith.constant 0 : index
    %c0_13 = arith.constant 0 : index
    %27 = vector.load %arg2[%c0_12, %c0_13] : memref<32x32xf32, #tpu.memory_space<vmem>>, vector<32x32xf32>
    %28 = arith.subf %27, %25 : vector<32x32xf32>
    %29 = arith.mulf %26, %28 : vector<32x32xf32>
    %30 = arith.mulf %29, %28 : vector<32x32xf32>
    %c0_14 = arith.constant 0 : index
    %c0_15 = arith.constant 0 : index
    %31 = vector.load %arg8[%c0_14, %c0_15] : memref<32x32xf32, #tpu.memory_space<vmem>>, vector<32x32xf32>
    %cst_16 = arith.constant dense<0.000000e+00> : vector<32x32xf32>
    %32 = tpu.matmul %30, %31, %cst_16 {dimension_numbers = #tpu.dot_dimension_numbers<[1], [0], [0], [1], [0, 0, 1, 1], [], []>} : vector<32x32xf32>, vector<32x32xf32>, vector<32x32xf32> -> vector<32x32xf32>
    %c0_17 = arith.constant 0 : index
    %c0_18 = arith.constant 0 : index
    %33 = vector.load %arg9[%c0_17, %c0_18] : memref<1x32xf32, #tpu.memory_space<vmem>>, vector<1x32xf32>
    %34 = vector.broadcast %33 : vector<1x32xf32> to vector<32x32xf32>
    %35 = arith.addf %32, %34 : vector<32x32xf32>
    %36 = arith.addf %0, %35 : vector<32x32xf32>
    %c0_19 = arith.constant 0 : index
    %c0_20 = arith.constant 0 : index
    %37 = vector.load %arg3[%c0_19, %c0_20] : memref<32x1xf32, #tpu.memory_space<vmem>>, vector<32x1xf32>
    %38 = vector.broadcast %37 : vector<32x1xf32> to vector<32x32xf32>
    %39 = arith.mulf %38, %36 : vector<32x32xf32>
    %c0_21 = arith.constant 0 : index
    %c0_22 = arith.constant 0 : index
    %40 = vector.load %arg10[%c0_21, %c0_22] : memref<32x32xf32, #tpu.memory_space<vmem>>, vector<32x32xf32>
    tpu.vector_store %arg10[%c0_21, %c0_22], %39 {strides = array<i32>} : memref<32x32xf32, #tpu.memory_space<vmem>>, vector<32x32xf32>,
    return
  }
  func.func @transform_0(%arg0: i32) -> (i32, i32) {
    %c0_i32 = arith.constant 0 : i32
    %c0_i32_0 = arith.constant 0 : i32
    return %arg0, %c0_i32 : i32, i32
  }
  func.func @transform_1(%arg0: i32) -> (i32, i32) {
    %c0_i32 = arith.constant 0 : i32
    %c0_i32_0 = arith.constant 0 : i32
    return %arg0, %c0_i32 : i32, i32
  }
  func.func @transform_2(%arg0: i32) -> (i32, i32) {
    %c0_i32 = arith.constant 0 : i32
    %c0_i32_0 = arith.constant 0 : i32
    return %arg0, %c0_i32 : i32, i32
  }
  func.func @transform_3(%arg0: i32) -> (i32, i32) {
    %c0_i32 = arith.constant 0 : i32
    %c0_i32_0 = arith.constant 0 : i32
    %c0_i32_1 = arith.constant 0 : i32
    return %c0_i32, %c0_i32_0 : i32, i32
  }
  func.func @transform_4(%arg0: i32) -> (i32, i32) {
    %c0_i32 = arith.constant 0 : i32
    %c0_i32_0 = arith.constant 0 : i32
    %c0_i32_1 = arith.constant 0 : i32
    return %c0_i32, %c0_i32_0 : i32, i32
  }
  func.func @transform_5(%arg0: i32) -> (i32, i32) {
    %c0_i32 = arith.constant 0 : i32
    %c0_i32_0 = arith.constant 0 : i32
    %c0_i32_1 = arith.constant 0 : i32
    return %c0_i32, %c0_i32_0 : i32, i32
  }
  func.func @transform_6(%arg0: i32) -> (i32, i32) {
    %c0_i32 = arith.constant 0 : i32
    %c0_i32_0 = arith.constant 0 : i32
    %c0_i32_1 = arith.constant 0 : i32
    return %c0_i32, %c0_i32_0 : i32, i32
  }
  func.func @transform_7(%arg0: i32) -> (i32, i32) {
    %c0_i32 = arith.constant 0 : i32
    %c0_i32_0 = arith.constant 0 : i32
    %c0_i32_1 = arith.constant 0 : i32
    return %c0_i32, %c0_i32_0 : i32, i32
  }
  func.func @transform_8(%arg0: i32) -> (i32, i32) {
    %c0_i32 = arith.constant 0 : i32
    %c0_i32_0 = arith.constant 0 : i32
    %c0_i32_1 = arith.constant 0 : i32
    return %c0_i32, %c0_i32_0 : i32, i32
  }
  func.func @transform_9(%arg0: i32) -> (i32, i32) {
    %c0_i32 = arith.constant 0 : i32
    %c0_i32_0 = arith.constant 0 : i32
    return %arg0, %c0_i32 : i32, i32
  }
}

</mosaic_0001>

<bundles_post_ra>
// kernel: tpu_custom_call.1
= control target key start
LH: loop header
LB: loop body
LE: loop exit
PB: predicated region body
PF: predicated region fallthrough
CT: control target
= control target key end

     0   :  { %14 = vsyncpa [#allocation3], 0  ;;  %s756_s0 = inlined_call_operand.vmem [shape: f32[32,32], index: 0, kind: input, shape index: {}]   ;;  %s757_s1 = inlined_call_operand.hbm [shape: f32[32,32], index: 1, kind: input, shape index: {}]   ;;  %s758_s2 = inlined_call_operand.vmem [shape: f32[32,1], index: 2, kind: input, shape index: {}]   ;;  %s759_s3 = inlined_call_operand.hbm [shape: f32[32,32], index: 3, kind: input, shape index: {}]   ;;  %s760_s4 = inlined_call_operand.vmem [shape: f32[1,32], index: 4, kind: input, shape index: {}]   ;;  %s761_s5 = inlined_call_operand.hbm [shape: f32[32,64], index: 5, kind: input, shape index: {}]   ;;  %s762_s6 = inlined_call_operand.vmem [shape: f32[1,64], index: 6, kind: input, shape index: {}]   ;;  %s763_s7 = inlined_call_operand.hbm [shape: f32[32,32], index: 7, kind: input, shape index: {}]   ;;  %s764_s8 = inlined_call_operand.vmem [shape: f32[1,32], index: 8, kind: input, shape index: {}]   ;;  %s765_s9 = inlined_call_operand.hbm [shape: f32[32,32], index: 9, kind: output, shape index: {}]  }
   0x1   :  { %15 = vsyncpa [#allocation6], 0 }
   0x2   :  { %16 = vsyncpa [#allocation9], 0 }
   0x3   :  { %17 = vsyncpa [#allocation4], 0  ;;  %s39_s11 = sshll.u32 %s759_s3, 4  ;;  %s601_s12 = smov [#allocation5]   ;;  %s40_s11 = int_to_ptr.hbm [resolvable:$true] %s39_s11 }
   0x4   :  { %s41_s13 = sshll.u32 %s601_s12, 4  ;;  %s24_s16 = sshll.u32 %s757_s1, 4  ;;  %s42_s13 = int_to_ptr.vmem [resolvable:$true] %s41_s13  ;;  %s25_s16 = int_to_ptr.hbm [resolvable:$true] %s24_s16 }
   0x5   :  { %s602_s17 = smov 128   ;;  %s603_s18 = smov 8  }
   0x6   :  { %47 = dma.hbm_to_vmem [thread:$0]  %s40_s11, 512, %s42_s13, [#allocation6], %s602_s17, %s602_s17, %s603_s18  }
   0x7   :  { %s604_s19 = smov [#allocation2]   ;;  %s54_s3 = sshll.u32 %s761_s5, 4  ;;  %s55_s3 = int_to_ptr.hbm [resolvable:$true] %s54_s3 }
   0x8   :  { %s26_s20 = sshll.u32 %s604_s19, 4  ;;  %s69_s24 = sshll.u32 %s763_s7, 4  ;;  %s27_s20 = int_to_ptr.vmem [resolvable:$true] %s26_s20  ;;  %s70_s24 = int_to_ptr.hbm [resolvable:$true] %s69_s24 }
   0x9   :  { %32 = dma.hbm_to_vmem [thread:$0]  %s25_s16, 512, %s27_s20, [#allocation3], %s602_s17, %s602_s17, %s603_s18  }
   0xa   :  { %s605_s25 = smov [#allocation7]   ;;  %s606_s27 = smov [#allocation8]  }
   0xb   :  { %s56_s26 = sshll.u32 %s605_s25, 4  ;;  %s71_s5 = sshll.u32 %s606_s27, 4  ;;  %s57_s26 = int_to_ptr.vmem [resolvable:$true] %s56_s26  ;;  %s72_s5 = int_to_ptr.vmem [resolvable:$true] %s71_s5 }
   0xc   :  { %62 = dma.hbm_to_vmem [thread:$0]  %s55_s3, 512, %s57_s26, [#allocation6], %s602_s17, %s602_s17, %s603_s18  }
   0xd   :  { %77 = dma.hbm_to_vmem [thread:$0]  %s70_s24, 512, %s72_s5, [#allocation9], %s602_s17, %s602_s17, %s603_s18  }
   0xe   :  { %593 = dma.done.wait [#allocation3], 512  }
   0xf   :  { %594 = vsyncadd [#allocation3], 4294966784 }
  0x10   :  { %595 = dma.done.wait [#allocation6], 1024  }
  0x11   :  { %596 = vsyncadd [#allocation6], 4294966272 }
  0x12   :  { %597 = dma.done.wait [#allocation9], 512  }
  0x13   :  { %598 = vsyncadd [#allocation9], 4294966784  ;;  %v103_v0 = vld [vmem:[#allocation5 + $0x18] sm:$0xff]  ;;  %v102_v1 = vld [vmem:[#allocation5 + $0x10] sm:$0xff]  ;;  %vm108_vm0 = vcmask 261120   ;;  %s607_s16 = smov 32  }
  0x14   :  { %429 = vmatpush.msra.mxu3 %v103_v0  ;;  %133 = vmatpush.msra.mxu0 %v103_v0  ;;  %v101_v2 = vld [vmem:[#allocation5 + $0x8] sm:$0xff]  ;;  %v100_v3 = vld [vmem:[#allocation5] sm:$0xff]  ;;  %v702_v6 = vld [vmem:[%s756_s0 + $0x10] sm:$0xff]  ;;  %s402_s7 = sshll.u32 %s765_s9, 4  ;;  %s403_s7 = int_to_ptr.hbm [resolvable:$true] %s402_s7 }
  0x15   :  { %v688_v4 = vld [vmem:[%s756_s0 + $0x8] sm:$0xff]  ;;  %v693_v5 = vld [vmem:[%s756_s0] sm:$0xff]  ;;  %v709_v7 = vld [vmem:[%s756_s0 + $0x18] sm:$0xff] }
  0x16   :  { %430 = vmatpush.msra.mxu3 %v102_v1  ;;  %134 = vmatpush.msra.mxu0 %v102_v1  ;;  %v225_v8 = vld [vmem:[#allocation7 + $0x18] sm:$0xff]  ;;  %v224_v9 = vld [vmem:[#allocation7 + $0x10] sm:$0xff]  ;;  %v454_v10 = vld [vmem:[%s760_s4] ss:$0 sm:$0xff] }
  0x17   :  { %433 = vmatpush.msra.mxu1 %v225_v8  ;;  %v223_v11 = vld [vmem:[#allocation7 + $0x8] sm:$0xff]  ;;  %v222_v12 = vld [vmem:[#allocation7] sm:$0xff] }
  0x18   :  { %431 = vmatpush.msra.mxu3 %v101_v2  ;;  %135 = vmatpush.msra.mxu0 %v101_v2 }
  0x19   :  { %434 = vmatpush.msra.mxu1 %v224_v9 }
  0x1a   :  { %432 = vmatpush.msra.mxu3 %v100_v3  ;;  %136 = vmatpush.msra.mxu0 %v100_v3 }
  0x1b   :  { %418 = vmatmul.msk.f32.vlgmr.msra.gmra.mxu3 %vm108_vm0, %v688_v4  ;;  %417 = vmatmul.msk.f32.vlgmr.msra.gmra.mxu0 %vm108_vm0, %v693_v5 }
  0x1c   :  { %254 = vmatpush.msrb.mxu0 %v225_v8  ;;  %435 = vmatpush.msra.mxu1 %v223_v11 }
  0x1e   :  { %255 = vmatpush.msrb.mxu0 %v224_v9  ;;  %436 = vmatpush.msra.mxu1 %v222_v12 }
  0x20   :  { %256 = vmatpush.msrb.mxu0 %v223_v11 }
  0x22   :  { %257 = vmatpush.msrb.mxu0 %v222_v12 }
  0x23   :  { %419 = vmatmul.msk.f32.gmra.mxu3 %vm108_vm0, %v702_v6 }
  0x2b   :  { %420 = vmatmul.msk.f32.gmra.mxu3 %vm108_vm0, %v709_v7 }
  0x98   :  { %v138_v13 = vpop.f32.mrf.mxu0 }
  0x99   :  { %v139_v14 = vadd.f32 %v454_v10, %v138_v13 }
  0x9b   :  { %v162_v15 = vand.u32 2147483647, %v139_v14  ;;  %v150_v40 = vmax.f32 %v139_v14, 0.0  ;;  %vm154_vm2 = vcmp.ne.f32.partialorder %v139_v14, %v139_v14 }
  0x9d   :  { %v166_v16 = vsub.f32 0.0, %v162_v15 }
  0x9e   :  { %v141_v17 = vpop.f32.mrf.mxu3 }
  0x9f   :  { %v170_v18 = vmul.f32 1.442695, %v166_v16  ;;  %v142_v19 = vadd.f32 %v454_v10, %v141_v17 }
  0xa1   :  { %457 = vpow2.f32 %v170_v18  ;;  %v163_v20 = vand.u32 2147483647, %v142_v19  ;;  %v151_v56 = vmax.f32 %v142_v19, 0.0  ;;  %vm155_vm4 = vcmp.ne.f32.partialorder %v142_v19, %v142_v19 }
  0xa3   :  { %v167_v21 = vsub.f32 0.0, %v163_v20 }
  0xa5   :  { %v172_v22 = vmul.f32 1.442695, %v167_v21  ;;  %v455_v21 = vld [vmem:[%s762_s6] ss:$0 sm:$0xff]  ;;  %s608_s6 = smov 96  }
  0xa6   :  { %v144_v23 = vpop.f32.mrf.mxu3 }
  0xa7   :  { %v458_v24 = vpop.eup %457  ;;  %459 = vpow2.f32 %v172_v22  ;;  %v145_v25 = vadd.f32 %v454_v10, %v144_v23  ;;  %v272_v23 = vld [vmem:[#allocation2 + $0x8] sm:$0xff] }
  0xa8   :  { %v178_v26 = vadd.f32 1.0, %v458_v24  ;;  %v181_v27 = vmul.f32 -0.5, %v458_v24  ;;  %v184_v31 = vand.u32 2147483647, %v458_v24 }
  0xa9   :  { %v164_v28 = vand.u32 2147483647, %v145_v25  ;;  %v152_v8 = vmax.f32 %v145_v25, 0.0  ;;  %vm156_vm6 = vcmp.ne.f32.partialorder %v145_v25, %v145_v25 }
  0xaa   :  { %461 = vlog2.f32 %v178_v26  ;;  %v182_v30 = vadd.f32 1.0, %v181_v27  ;;  %vm185_vm1 = vcmp.lt.f32.partialorder %v184_v31, 0.0004427343  ;;  %v273_v27 = vld [vmem:[#allocation2 + $0x10] sm:$0xff]  ;;  %v274_v31 = vld [vmem:[#allocation2 + $0x18] sm:$0xff] }
  0xab   :  { %v168_v29 = vsub.f32 0.0, %v164_v28 }
  0xac   :  { %v183_v37 = vmul.f32 %v458_v24, %v182_v30 }
  0xad   :  { %v460_v32 = vpop.eup %459  ;;  %v174_v33 = vmul.f32 1.442695, %v168_v29 }
  0xae   :  { %v147_v34 = vpop.f32.mrf.mxu3  ;;  %v187_v35 = vadd.f32 1.0, %v460_v32  ;;  %v190_v38 = vmul.f32 -0.5, %v460_v32  ;;  %v193_v47 = vand.u32 2147483647, %v460_v32 }
  0xaf   :  { %463 = vpow2.f32 %v174_v33  ;;  %v148_v36 = vadd.f32 %v454_v10, %v147_v34 }
  0xb0   :  { %v462_v39 = vpop.eup %461  ;;  %465 = vlog2.f32 %v187_v35  ;;  %v191_v45 = vadd.f32 1.0, %v190_v38  ;;  %vm194_vm3 = vcmp.lt.f32.partialorder %v193_v47, 0.0004427343  ;;  %v306_v38 = vld [vmem:[#allocation8 + $0x18] sm:$0xff] }
  0xb1   :  { %v165_v41 = vand.u32 2147483647, %v148_v36  ;;  %v180_v42 = vmul.f32 0.6931472, %v462_v39  ;;  %v153_v17 = vmax.f32 %v148_v36, 0.0  ;;  %vm157_vm8 = vcmp.ne.f32.partialorder %v148_v36, %v148_v36  ;;  %v305_v39 = vld [vmem:[#allocation8 + $0x10] sm:$0xff]  ;;  %437 = vmatpush.msra.mxu2 %v306_v38  ;;  %343 = vmatpush.msra.mxu0 %v306_v38 }
  0xb2   :  { %v192_v54 = vmul.f32 %v460_v32, %v191_v45 }
  0xb3   :  { %v169_v43 = vsub.f32 0.0, %v165_v41  ;;  %v186_v44 = vsel %vm185_vm1, %v183_v37, %v180_v42  ;;  %438 = vmatpush.msra.mxu2 %v305_v39  ;;  %344 = vmatpush.msra.mxu0 %v305_v39 }
  0xb4   :  { %v214_v46 = vadd.f32 %v186_v44, %v150_v40  ;;  %v304_v40 = vld [vmem:[#allocation8 + $0x8] sm:$0xff] }
  0xb5   :  { %v464_v48 = vpop.eup %463  ;;  %v176_v49 = vmul.f32 1.442695, %v169_v43  ;;  %v303_v43 = vld [vmem:[#allocation8] sm:$0xff]  ;;  %439 = vmatpush.msra.mxu2 %v304_v40  ;;  %345 = vmatpush.msra.mxu0 %v304_v40 }
  0xb6   :  { %v466_v50 = vpop.eup %465  ;;  %v218_v51 = vsel %vm154_vm2, %v139_v14, %v214_v46  ;;  %v196_v52 = vadd.f32 1.0, %v464_v48  ;;  %v199_v55 = vmul.f32 -0.5, %v464_v48  ;;  %v202_v61 = vand.u32 2147483647, %v464_v48 }
  0xb7   :  { %467 = vpow2.f32 %v176_v49  ;;  %421 = vmatmul.msk.f32.vlgmr.msrb.gmra.mxu0 %vm108_vm0, %v218_v51  ;;  %v189_v53 = vmul.f32 0.6931472, %v466_v50  ;;  %440 = vmatpush.msra.mxu2 %v303_v43 }
  0xb8   :  { %469 = vlog2.f32 %v196_v52  ;;  %v200_v59 = vadd.f32 1.0, %v199_v55  ;;  %vm203_vm5 = vcmp.lt.f32.partialorder %v202_v61, 0.0004427343  ;;  %346 = vmatpush.msra.mxu0 %v303_v43  ;;  %v366_v55 = vld [vmem:[%s758_s2 + $0x10] sm:$0xff] }
  0xb9   :  { %v195_v57 = vsel %vm194_vm3, %v192_v54, %v189_v53  ;;  %v365_v54 = vld [vmem:[%s758_s2 + $0x8] sm:$0xff] }
  0xba   :  { %v215_v58 = vadd.f32 %v195_v57, %v151_v56  ;;  %v201_v2 = vmul.f32 %v464_v48, %v200_v59  ;;  %v609_v56 = vmov 0   ;;  %v364_v59 = vld [vmem:[%s758_s2] sm:$0xff] }
  0xbb   :  { %452 = vset.pattern.permute.xlu0 %v609_v56  ;;  %453 = vset.pattern.permute.xlu1 %v609_v56 }
  0xbc   :  { %v219_v60 = vsel %vm155_vm4, %v142_v19, %v215_v58  ;;  %451 = vset.pattern.permute.xlu2 %v609_v56 }
  0xbd   :  { %v468_v62 = vpop.eup %467  ;;  %422 = vmatmul.msk.f32.vlgmr.msra.gmra.mxu1 %vm108_vm0, %v219_v60  ;;  %v367_v60 = vld [vmem:[%s758_s2 + $0x18] sm:$0xff]  ;;  %s610_s2 = smov [#allocation10]  }
  0xbe   :  { %v470_v63 = vpop.eup %469  ;;  %v205_v0 = vadd.f32 1.0, %v468_v62  ;;  %v208_v3 = vmul.f32 -0.5, %v468_v62  ;;  %v211_v13 = vand.u32 2147483647, %v468_v62 }
  0xbf   :  { %v198_v1 = vmul.f32 0.6931472, %v470_v63  ;;  %v456_v63 = vld [vmem:[%s764_s8] ss:$0 sm:$0xff]  ;;  %s400_s8 = sshll.u32 %s610_s2, 4  ;;  %s401_s8 = int_to_ptr.vmem [resolvable:$true] %s400_s8 }
  0xc0   :  { %471 = vlog2.f32 %v205_v0  ;;  %v209_v11 = vadd.f32 1.0, %v208_v3  ;;  %vm212_vm7 = vcmp.lt.f32.partialorder %v211_v13, 0.0004427343 }
  0xc1   :  { %v204_v9 = vsel %vm203_vm5, %v201_v2, %v198_v1 }
  0xc2   :  { %v216_v10 = vadd.f32 %v204_v9, %v152_v8  ;;  %v210_v16 = vmul.f32 %v468_v62, %v209_v11 }
  0xc4   :  { %v220_v12 = vsel %vm156_vm6, %v145_v25, %v216_v10 }
  0xc5   :  { %423 = vmatmul.msk.f32.gmra.mxu1 %vm108_vm0, %v220_v12 }
  0xc6   :  { %v472_v14 = vpop.eup %471 }
  0xc7   :  { %v207_v15 = vmul.f32 0.6931472, %v472_v14 }
  0xc9   :  { %v213_v18 = vsel %vm212_vm7, %v210_v16, %v207_v15 }
  0xca   :  { %v217_v19 = vadd.f32 %v213_v18, %v153_v17 }
  0xcc   :  { %v221_v20 = vsel %vm157_vm8, %v148_v36, %v217_v19  ;;  %v271_v36 = vld [vmem:[#allocation2] sm:$0xff] }
  0xcd   :  { %424 = vmatmul.msk.f32.gmra.mxu1 %vm108_vm0, %v221_v20 }
 0x134   :  { %v259_v34 = vpop.f32.mrf.mxu0 }
 0x135   :  { %v260_v35 = vadd.f32 %v455_v21, %v259_v34 }
 0x137   :  { %v275_v37 = vsub.f32 %v271_v36, %v260_v35 }
 0x13a   :  { %v262_v22 = vpop.f32.mrf.mxu1 }
 0x13b   :  { %v263_v24 = vadd.f32 %v455_v21, %v262_v22 }
 0x13d   :  { %v276_v25 = vsub.f32 %v272_v23, %v263_v24 }
 0x13f   :  { %285 = vrot.lane.b32.xlu0 %v276_v25, %s607_s16 }
 0x142   :  { %v265_v26 = vpop.f32.mrf.mxu1 }
 0x143   :  { %v266_v28 = vadd.f32 %v455_v21, %v265_v26 }
 0x145   :  { %v277_v29 = vsub.f32 %v273_v27, %v266_v28 }
 0x147   :  { %287 = vrot.lane.b32.xlu0 %v277_v29, %s607_s16 }
 0x14a   :  { %v268_v30 = vpop.f32.mrf.mxu1 }
 0x14b   :  { %v269_v32 = vadd.f32 %v455_v21, %v268_v30 }
 0x14d   :  { %v278_v33 = vsub.f32 %v274_v31, %v269_v32 }
 0x14f   :  { %289 = vrot.lane.b32.xlu1 %v278_v33, %s607_s16 }
 0x157   :  { %283 = vrot.lane.b32.xlu1 %v275_v37, %s607_s16 }
 0x1b1   :  { %v286_v41 = vpop.permute.xlu0 %285 }
 0x1b2   :  { %v296_v42 = vmul.f32 %v286_v41, %v263_v24 }
 0x1b4   :  { %v300_v44 = vmul.f32 %v296_v42, %v286_v41 }
 0x1b6   :  { %317 = vrot.lane.b32.xlu2 %v300_v44, %s608_s6 }
 0x1b9   :  { %v288_v45 = vpop.permute.xlu0 %287 }
 0x1ba   :  { %v297_v46 = vmul.f32 %v288_v45, %v266_v28 }
 0x1bc   :  { %v301_v47 = vmul.f32 %v297_v46, %v288_v45 }
 0x1be   :  { %319 = vrot.lane.b32.xlu2 %v301_v47, %s608_s6 }
 0x1c1   :  { %v290_v48 = vpop.permute.xlu1 %289 }
 0x1c2   :  { %v298_v49 = vmul.f32 %v290_v48, %v269_v32 }
 0x1c4   :  { %v302_v50 = vmul.f32 %v298_v49, %v290_v48 }
 0x1c6   :  { %321 = vrot.lane.b32.xlu0 %v302_v50, %s608_s6  ;;  %370 = vperm.xlu2 %451, %v364_v59  }
 0x1c9   :  { %v284_v51 = vpop.permute.xlu1 %283 }
 0x1ca   :  { %v295_v52 = vmul.f32 %v284_v51, %v260_v35 }
 0x1cc   :  { %v299_v53 = vmul.f32 %v295_v52, %v284_v51 }
 0x1ce   :  { %315 = vrot.lane.b32.xlu1 %v299_v53, %s608_s6  ;;  %375 = vperm.xlu0 %452, %v365_v54  }
 0x1cf   :  { %385 = vperm.xlu2 %451, %v367_v60  }
 0x1d6   :  { %380 = vperm.xlu1 %453, %v366_v55  }
 0x210   :  { %v318_v57 = vpop.permute.xlu2 %317 }
 0x211   :  { %426 = vmatmul.msk.f32.vlgmr.msra.gmra.mxu2 %vm108_vm0, %v318_v57 }
 0x218   :  { %v320_v58 = vpop.permute.xlu2 %319 }
 0x219   :  { %427 = vmatmul.msk.f32.gmra.mxu2 %vm108_vm0, %v320_v58 }
 0x220   :  { %v371_v14 = vpop.permute.xlu2 %370 }
 0x229   :  { %v386_v20 = vpop.permute.xlu2 %385 }
 0x238   :  { %v322_v61 = vpop.permute.xlu0 %321 }
 0x239   :  { %428 = vmatmul.msk.f32.gmra.mxu2 %vm108_vm0, %v322_v61 }
 0x240   :  { %v316_v62 = vpop.permute.xlu1 %315  ;;  %v376_v2 = vpop.permute.xlu0 %375 }
 0x241   :  { %425 = vmatmul.msk.f32.vlgmr.msra.gmra.mxu0 %vm108_vm0, %v316_v62 }
 0x248   :  { %v381_v11 = vpop.permute.xlu1 %380 }
 0x294   :  { %v351_v0 = vpop.f32.mrf.mxu2 }
 0x295   :  { %v352_v1 = vadd.f32 %v456_v63, %v351_v0 }
 0x297   :  { %v361_v3 = vadd.f32 %v352_v1, %v688_v4 }
 0x299   :  { %v389_v8 = vmul.f32 %v376_v2, %v361_v3 }
 0x29b   :  { %393 = vst.msk [vmem:[#allocation10 + $0x8] sm:$0xff] %vm108_vm0, %v389_v8 }
 0x29c   :  { %v354_v9 = vpop.f32.mrf.mxu2 }
 0x29d   :  { %v355_v10 = vadd.f32 %v456_v63, %v354_v9 }
 0x29f   :  { %v362_v12 = vadd.f32 %v355_v10, %v702_v6 }
 0x2a1   :  { %v390_v13 = vmul.f32 %v381_v11, %v362_v12 }
 0x2a3   :  { %394 = vst.msk [vmem:[#allocation10 + $0x10] sm:$0xff] %vm108_vm0, %v390_v13 }
 0x2bc   :  { %v357_v15 = vpop.f32.mrf.mxu2 }
 0x2bd   :  { %v358_v16 = vadd.f32 %v456_v63, %v357_v15 }
 0x2be   :  { %v348_v17 = vpop.f32.mrf.mxu0 }
 0x2bf   :  { %v363_v18 = vadd.f32 %v358_v16, %v709_v7  ;;  %v349_v19 = vadd.f32 %v456_v63, %v348_v17 }
 0x2c1   :  { %v391_v4 = vmul.f32 %v386_v20, %v363_v18  ;;  %v360_v6 = vadd.f32 %v349_v19, %v693_v5 }
 0x2c3   :  { %395 = vst.msk [vmem:[#allocation10 + $0x18] sm:$0xff] %vm108_vm0, %v391_v4  ;;  %v388_v21 = vmul.f32 %v371_v14, %v360_v6 }
 0x2c5   :  { %392 = vst.msk [vmem:[#allocation10] sm:$0xff] %vm108_vm0, %v388_v21 }
 0x2c6   :  { %408 = dma.vmem_to_hbm [thread:$0]  %s401_s8, 512, %s403_s7, [#allocation4], %s602_s17, %s602_s17, %s603_s18  }
 0x2c7   :  { %599 = dma.done.wait [#allocation4], 512  }
 0x2c8   :  { %600 = vsyncadd [#allocation4], 4294966784 }
 0x2c9   :  { %413 = vsyncpa [#allocation3], 1 }
 0x2ca   :  { %414 = vsyncpa [#allocation6], 1 }
 0x2cb   :  { %415 = vsyncpa [#allocation9], 1 }
 0x2cc   :  { %416 = vsyncpa [#allocation4], 1 }

</bundles_post_ra>
